<compile_context>
chip_gen: v7x
topology: tpu7x:2x2x1
jax: 0.10.0
libtpu: 0.0.40
codegen_flags: <defaults>
</compile_context>

<pallas_src>
import functools

import jax
import jax.numpy as jnp
from jax.experimental import pallas as pl
from jax.experimental.pallas import tpu as pltpu


def _round_up(x, m):
    return ((x + m - 1) // m) * m


def _patch_proj_kernel(x_ref, w_ref, b_ref, o_ref):
    # x_ref: (tm, K)  bf16 patches tile
    # w_ref: (K, N)   bf16 projection matrix (VMEM-resident across steps)
    # b_ref: (1, N)   f32 bias (VMEM-resident across steps)
    # o_ref: (tm, N)  output tile (f32 by default)
    acc = jnp.dot(x_ref[...], w_ref[...], preferred_element_type=jnp.float32)
    o_ref[...] = (acc + b_ref[...]).astype(o_ref.dtype)


def _patch_proj(patches, weight, bias2d, *, tm, out_dtype):
    """patches: [M, K] bf16, weight: [K, N] bf16, bias2d: [1, N] f32."""
    M, K = patches.shape
    N = weight.shape[1]
    grid_m = pl.cdiv(M, tm)  # no M padding; last block over-reads / masked-writes

    return pl.pallas_call(
        _patch_proj_kernel,
        out_shape=jax.ShapeDtypeStruct((M, N), out_dtype),
        grid_spec=pltpu.PrefetchScalarGridSpec(
            num_scalar_prefetch=0,
            grid=(grid_m,),
            in_specs=[
                pl.BlockSpec((tm, K), lambda i: (i, 0)),
                pl.BlockSpec((K, N), lambda i: (0, 0)),   # resident
                pl.BlockSpec((1, N), lambda i: (0, 0)),   # resident
            ],
            # Full-extent last dim (N == embed_dim) is legal and avoids any
            # post-kernel depad slice.
            out_specs=pl.BlockSpec((tm, N), lambda i: (i, 0)),
        ),
        compiler_params=pltpu.CompilerParams(
            dimension_semantics=("parallel",),
            # Hint only; the producing transpose likely stays a separate XLA op.
            allow_input_fusion=[True, True, True],
        ),
    )(patches, weight, bias2d)


@functools.partial(
    jax.jit,
    static_argnames=("patch_size", "embed_dim", "tm", "compute_dtype", "out_dtype"))
def _patch_embed_forward(x, weight, bias, *, patch_size, embed_dim,
                         tm=4096, compute_dtype=jnp.bfloat16,
                         out_dtype=jnp.float32):
    """x: NCHW [B, C, H, W] f32; weight: [N, C, ph, pw]; bias: [N]."""
    ph, pw = patch_size
    B, C, H, W = x.shape
    if W % pw != 0:
        x = jnp.pad(x, ((0, 0), (0, 0), (0, 0), (0, pw - W % pw)))
    if H % ph != 0:
        x = jnp.pad(x, ((0, 0), (0, 0), (0, ph - H % ph), (0, 0)))
    Hp, Wp = x.shape[2] // ph, x.shape[3] // pw
    K = C * ph * pw
    M = B * Hp * Wp
    N = embed_dim

    # Patch extraction, flattened in (c, kh, kw) order to match
    # nn.Conv2d weight.reshape(N, -1).  Cast to bf16 in the same fusion.
    xp = x.reshape(B, C, Hp, ph, Wp, pw)
    xp = jnp.transpose(xp, (0, 2, 4, 1, 3, 5))            # [B, Hp, Wp, C, ph, pw]
    patches = xp.reshape(M, K).astype(compute_dtype)      # [M, K]
    # TODO(synk): accept NHWC input or gather patches in-kernel to remove this
    # standalone HBM pass (see header note).

    # Weight [N, C, ph, pw] -> [K, N] (no lane padding: kernel writes N directly).
    w = weight.reshape(N, K).T.astype(compute_dtype)      # [K, N]
    bias2d = bias.astype(jnp.float32).reshape(1, N)       # [1, N]

    # Tile: multiple of 16 (bf16 sublane packing), capped at the (rounded) M.
    # tm=4096 keeps double-buffered blocks ~4 MiB -> safe on v7x's 64 MiB VMEM
    # while leaving >=2 grid steps at real Swin sizes for the v7x dual-TC split.
    tm_eff = min(tm, _round_up(M, 16))

    out = _patch_proj(patches, w, bias2d, tm=tm_eff, out_dtype=out_dtype)  # [M, N]
    return out.reshape(B, Hp, Wp, N)                       # matches permute(0,2,3,1)


class PatchEmbed:
    """JAX/Pallas port of the Swin PatchEmbed module (norm_layer=None)."""

    def __init__(self, patch_size=4, in_chans=3, embed_dim=96, key=None):
        self.patch_size = (patch_size, patch_size)
        self.in_chans = in_chans
        self.embed_dim = embed_dim
        if key is None:
            key = jax.random.PRNGKey(0)
        kw, kb = jax.random.split(key)
        ph, pw = self.patch_size
        fan_in = in_chans * ph * pw
        bound = 1.0 / jnp.sqrt(fan_in)
        # Conv2d weight: [embed_dim, in_chans, ph, pw] (PyTorch convention).
        self.proj_weight = jax.random.uniform(
            kw, (embed_dim, in_chans, ph, pw), jnp.float32, -bound, bound)
        self.proj_bias = jax.random.uniform(
            kb, (embed_dim,), jnp.float32, -bound, bound)
        # TODO(synk): norm_layer is None in this config; a LayerNorm epilogue
        # could be fused into the kernel (per-row, so the masked last block
        # stays safe) if a normed variant is needed.

    def __call__(self, x, tm=4096, out_dtype=jnp.float32):
        return _patch_embed_forward(
            x, self.proj_weight, self.proj_bias,
            patch_size=self.patch_size, embed_dim=self.embed_dim,
            tm=tm, out_dtype=out_dtype)


def _reference(x, weight, bias, patch_size):
    """Pure-JAX reference (conv via lax.conv_general_dilated)."""
    ph, pw = patch_size
    B, C, H, W = x.shape
    if W % pw != 0:
        x = jnp.pad(x, ((0, 0), (0, 0), (0, 0), (0, pw - W % pw)))
    if H % ph != 0:
        x = jnp.pad(x, ((0, 0), (0, 0), (0, ph - H % ph), (0, 0)))
    y = jax.lax.conv_general_dilated(
        x, weight, window_strides=(ph, pw), padding="VALID",
        dimension_numbers=("NCHW", "OIHW", "NCHW"))
    y = y + bias.reshape(1, -1, 1, 1)
    return jnp.transpose(y, (0, 2, 3, 1))


if __name__ == "__main__":
    key = jax.random.PRNGKey(0)
    k_x, k_p = jax.random.split(key)

    B, C, H, W = 2, 4, 16, 16
    patch_size, embed_dim = 4, 32

    x = jax.random.normal(k_x, (B, C, H, W), jnp.float32)

    mod = PatchEmbed(patch_size=patch_size, in_chans=C, embed_dim=embed_dim, key=k_p)
    out = mod(x)
    out = jax.block_until_ready(out)

    # Reference computed from the same bf16-rounded inputs so only accumulation
    # order differs (kernel does a bf16 MXU matmul with f32 accumulation).
    # NOTE: this is an intentional precision difference vs PyTorch's f32 Conv2d.
    x_r = x.astype(jnp.bfloat16).astype(jnp.float32)
    w_r = mod.proj_weight.astype(jnp.bfloat16).astype(jnp.float32)
    ref = _reference(x_r, w_r, mod.proj_bias, mod.patch_size)

    assert out.shape == (B, H // patch_size, W // patch_size, embed_dim), out.shape
    assert jnp.allclose(out, ref, atol=1e-3, rtol=1e-3), float(jnp.max(jnp.abs(out - ref)))

    print("KERNEL_OK")
</pallas_src>

<mosaic_0001>
module attributes {stable_mosaic.version = 11 : i64} {
  func.func @_patch_proj_kernel(%arg0: i32, %arg1: memref<32x64xbf16, #tpu.memory_space<vmem>>, %arg2: memref<64x32xbf16, #tpu.memory_space<vmem>>, %arg3: memref<1x32xf32, #tpu.memory_space<vmem>>, %arg4: memref<32x32xf32, #tpu.memory_space<vmem>>) attributes {dimension_semantics = [#tpu.dimension_semantics<parallel>], iteration_bounds = array<i64: 1>, scalar_prefetch = 0 : i64, scratch_operands = 0 : i64, tpu.core_type = #tpu.core_type<tc>, window_params = [{transform_indices = @transform_0, window_bounds = array<i64: 32, 64>}, {pipeline_mode = #tpu.pipeline_mode<synchronous>, transform_indices = @transform_1, window_bounds = array<i64: 64, 32>}, {pipeline_mode = #tpu.pipeline_mode<synchronous>, transform_indices = @transform_2, window_bounds = array<i64: 1, 32>}, {transform_indices = @transform_3, window_bounds = array<i64: 32, 32>}]} {
    %c0 = arith.constant 0 : index
    %c0_0 = arith.constant 0 : index
    %0 = vector.load %arg1[%c0, %c0_0] : memref<32x64xbf16, #tpu.memory_space<vmem>>, vector<32x64xbf16>
    %c0_1 = arith.constant 0 : index
    %c0_2 = arith.constant 0 : index
    %1 = vector.load %arg2[%c0_1, %c0_2] : memref<64x32xbf16, #tpu.memory_space<vmem>>, vector<64x32xbf16>
    %cst = arith.constant dense<0.000000e+00> : vector<32x32xf32>
    %2 = tpu.matmul %0, %1, %cst {dimension_numbers = #tpu.dot_dimension_numbers<[1], [0], [0], [1], [0, 0, 1, 1], [], []>} : vector<32x64xbf16>, vector<64x32xbf16>, vector<32x32xf32> -> vector<32x32xf32>
    %c0_3 = arith.constant 0 : index
    %c0_4 = arith.constant 0 : index
    %3 = vector.load %arg3[%c0_3, %c0_4] : memref<1x32xf32, #tpu.memory_space<vmem>>, vector<1x32xf32>
    %4 = vector.broadcast %3 : vector<1x32xf32> to vector<32x32xf32>
    %5 = arith.addf %2, %4 : vector<32x32xf32>
    %c0_5 = arith.constant 0 : index
    %c0_6 = arith.constant 0 : index
    %6 = vector.load %arg4[%c0_5, %c0_6] : memref<32x32xf32, #tpu.memory_space<vmem>>, vector<32x32xf32>
    tpu.vector_store %arg4[%c0_5, %c0_6], %5 {strides = array<i32>} : memref<32x32xf32, #tpu.memory_space<vmem>>, vector<32x32xf32>,
    return
  }
  func.func @transform_0(%arg0: i32) -> (i32, i32) {
    %c0_i32 = arith.constant 0 : i32
    %c0_i32_0 = arith.constant 0 : i32
    return %arg0, %c0_i32 : i32, i32
  }
  func.func @transform_1(%arg0: i32) -> (i32, i32) {
    %c0_i32 = arith.constant 0 : i32
    %c0_i32_0 = arith.constant 0 : i32
    %c0_i32_1 = arith.constant 0 : i32
    return %c0_i32, %c0_i32_0 : i32, i32
  }
  func.func @transform_2(%arg0: i32) -> (i32, i32) {
    %c0_i32 = arith.constant 0 : i32
    %c0_i32_0 = arith.constant 0 : i32
    %c0_i32_1 = arith.constant 0 : i32
    return %c0_i32, %c0_i32_0 : i32, i32
  }
  func.func @transform_3(%arg0: i32) -> (i32, i32) {
    %c0_i32 = arith.constant 0 : i32
    %c0_i32_0 = arith.constant 0 : i32
    return %arg0, %c0_i32 : i32, i32
  }
}

</mosaic_0001>

<bundles_post_ra>
// kernel: _patch_embed_forward.2
= control target key start
LH: loop header
LB: loop body
LE: loop exit
PB: predicated region body
PF: predicated region fallthrough
CT: control target
= control target key end

     0   :  { %vm72_vm0 = vcmask 523264   ;;  %s265_s0 = inlined_call_operand.vmem [shape: bf16[32,64], index: 0, kind: input, shape index: {}]   ;;  %s266_s1 = inlined_call_operand.vmem [shape: bf16[64,32], index: 1, kind: input, shape index: {}]   ;;  %s267_s2 = inlined_call_operand.vmem [shape: f32[32], index: 2, kind: input, shape index: {}]   ;;  %s268_s3 = inlined_call_operand.hbm [shape: f32[32,32], index: 3, kind: output, shape index: {}]  }
   0x1   :  { %v179_v0 = vld [vmem:[%s266_s1] sm:$0xff]   ;;  %v180_v1 = vld [vmem:[%s266_s1 + $0x8] sm:$0xff]   ;;  %v181_v2 = vld [vmem:[%s266_s1 + $0x10] sm:$0xff]  }
   0x2   :  { %164 = vmatprep.subr.bf16.mxu0 %v179_v0  ;;  %v183_v3 = vld [vmem:[%s265_s0] sm:$0xff]  }
   0x3   :  { %165 = vmatpush3.bf16.msra.mxu0 %v179_v0  ;;  %172 = vmatprep.mubr.msk.bf16.mxu0 %vm72_vm0, %v183_v3  ;;  %v15_v4 = vld [vmem:[%s267_s2] sm:$0x1] }
   0x4   :  { %166 = vmatprep.subr.bf16.mxu0 %v180_v1 }
   0x5   :  { %8 = vsyncpa [#allocation3], 0  ;;  %17 = vst [vmem:[#allocation4] sm:$0x1] %v15_v4  ;;  %v182_v5 = vld [vmem:[%s266_s1 + $0x18] sm:$0xff]   ;;  %v184_v6 = vld [vmem:[%s265_s0 + $0x8] sm:$0xff]  }
   0x6   :  { %vm128_vm1 = vcmask 261120   ;;  %s209_s2 = smov [#allocation2]  }
   0x7   :  { %167 = vmatpush3.bf16.msra.mxu0 %v180_v1  ;;  %s138_s26 = sshll.u32 %s209_s2, 4  ;;  %s139_s26 = int_to_ptr.vmem [resolvable:$true] %s138_s26 }
   0x8   :  { %168 = vmatprep.subr.bf16.mxu0 %v181_v2  ;;  %s185_s0 = scalar_lea.vmem %s139_s26, 512  ;;  %p190_p1 = scmp.lt.s32.totalorder %s139_s26, %s139_s26 }
   0x9   :  { %p186_p0 = scmp.ne.s32.totalorder %s139_s26, %s185_s0  ;;  %p191_p2 = scmp.lt.s32.totalorder %s185_s0, %s185_s0 }
   0xb   :  { %169 = vmatpush3.bf16.msra.mxu0 %v181_v2  ;;  %p192_p3 = por %p191_p2, %p190_p1 }
   0xc   :  { %170 = vmatprep.subr.bf16.mxu0 %v182_v5  ;;  %v149_v7 = vld [vmem:[#allocation4] ss:$0 sm:$0xff] }
   0xd   :  { %p193_p4 = pnand %p192_p3, %p186_p0 }
   0xf   :  { %171 = vmatpush3.bf16.msra.mxu0 %v182_v5 }
  0x12   :  { %173 = vmatmul.mubr.msk.bf16.vlgmr.msra.gmra.mrb[0].mxu0 %vm72_vm0, %v184_v6 }
  0xe5   :  { %v174_v8 = vpop.f32.mrb[0].mxu0 }
  0xe6   :  { %v122_v9 = vadd.f32 %v174_v8, %v149_v7  ;;  %v113_v10 = vpop.f32.mrb[1].mxu0 }
  0xe7   :  { %v114_v11 = vadd.f32 %v149_v7, %v113_v10  ;;  %v175_v12 = vpop.f32.mrb[2].mxu0 }
  0xe8   :  { %131 = vst.msk [vmem:[#allocation2 + $0x10] sm:$0xff] %vm128_vm1, %v122_v9  ;;  %v125_v13 = vadd.f32 %v175_v12, %v149_v7  ;;  %v116_v14 = vpop.f32.mrb[3].mxu0 }
  0xe9   :  { %129 = vst.msk [vmem:[#allocation2] sm:$0xff] %vm128_vm1, %v114_v11  ;;  %v117_v15 = vadd.f32 %v149_v7, %v116_v14 }
  0xea   :  { %132 = vst.msk [vmem:[#allocation2 + $0x18] sm:$0xff] %vm128_vm1, %v125_v13 }
  0xeb   :  { %130 = vst.msk [vmem:[#allocation2 + $0x8] sm:$0xff] %vm128_vm1, %v117_v15 }
  0xec   :  { %196 = shalt.err (!%p193_p4)
}
  0xed   :  { %s197_s28 = scalar_lea.hbm %s268_s3, 512 }
  0xee   :  { %p198_p5 = scmp.ne.s32.totalorder %s268_s3, %s197_s28  ;;  %p201_p6 = scmp.lt.u32.totalorder %s197_s28, %s268_s3 }
  0xf0   :  { %p203_p7 = pnand %p201_p6, %p198_p5 }
  0xf2   :  { %206 = shalt.err (!%p203_p7)
}
  0xf3   :  { %s210_s6 = smov 128   ;;  %s211_s7 = smov 8  }
  0xf4   :  { %144 = dma.vmem_to_hbm [thread:$0]  %s139_s26, 512, %s268_s3, [#allocation3], %s210_s6, %s210_s6, %s211_s7  }
  0xf5   :  { %207 = dma.done.wait [#allocation3], 512  }
  0xf6   :  { %208 = vsyncadd [#allocation3], 4294966784 }
  0xf7   :  { %148 = vsyncpa [#allocation3], 1 }

</bundles_post_ra>
